<compile_context>
chip_gen: v5e
topology: v5e:2x2
jax: 0.10.0
libtpu: 0.0.40
codegen_flags: <defaults>
</compile_context>

<pallas_src>
import jax
import jax.numpy as jnp
from jax.experimental import pallas as pl
from jax.experimental.pallas import tpu as pltpu


def _round_up(n, m):
    return ((n + m - 1) // m) * m


def _choose_batch_tile(B, block_b=1024):
    """Batch tile selection.

    * Small batches: one exact tile (splitting only adds ~0.35us/step overhead).
    * Large batches: balanced tiles, multiple of 16 (bf16 sublane packing),
      capped at block_b rows, and at least 2 grid steps so the 'parallel'
      batch axis actually spans both v7x TensorCores (no-op on v5e/v6e).
    """
    if B < 512:
        return _round_up(B, 8)
    n_steps = max(2, pl.cdiv(B, block_b))
    return _round_up(pl.cdiv(B, n_steps), 16)


def _mlp_kernel(x_ref, w1_ref, b1_ref, w2_ref, b2_ref, w3_ref, b3_ref, o_ref):
    # x tile arrives f32 straight from HBM (no wrapper pad/cast pass); cast to
    # bf16 only as an MXU operand, accumulate in f32.
    x = x_ref[...].astype(jnp.bfloat16)

    h1 = jnp.dot(x, w1_ref[...], preferred_element_type=jnp.float32) + b1_ref[...]
    h1 = 0.5 * (jnp.tanh(0.5 * h1) + 1.0)            # sigmoid via tanh: 1 EUP op/elem

    h2 = jnp.dot(h1.astype(jnp.bfloat16), w2_ref[...],
                 preferred_element_type=jnp.float32) + b2_ref[...]
    h2 = 0.5 * (jnp.tanh(0.5 * h2) + 1.0)

    h3 = jnp.dot(h2.astype(jnp.bfloat16), w3_ref[...],
                 preferred_element_type=jnp.float32) + b3_ref[...]
    o_ref[...] = h3.astype(o_ref.dtype)


def prepare_params(params):
    """One-time parameter prep (hoisted out of the per-call forward path).

    Weights -> bf16 (MXU-native), stored [in, out]; biases -> f32, shape [1, out].
    """
    return {
        "w1": params["w1"].astype(jnp.bfloat16),
        "b1": params["b1"].reshape(1, -1).astype(jnp.float32),
        "w2": params["w2"].astype(jnp.bfloat16),
        "b2": params["b2"].reshape(1, -1).astype(jnp.float32),
        "w3": params["w3"].astype(jnp.bfloat16),
        "b3": params["b3"].reshape(1, -1).astype(jnp.float32),
    }


def linear_classifier_forward(x, prepped, *, block_b=1024):
    """x: [B, input_dims] float32. prepped: output of prepare_params().

    Returns [B, n_classes] float32 (same semantics as the PyTorch forward).
    """
    w1, b1 = prepped["w1"], prepped["b1"]
    w2, b2 = prepped["w2"], prepped["b2"]
    w3, b3 = prepped["w3"], prepped["b3"]

    B, D = x.shape
    H1 = w1.shape[1]          # 128
    H2 = w2.shape[1]          # 256
    C = w3.shape[1]           # n_classes (kept unpadded)

    TB = _choose_batch_tile(B, block_b)
    grid = (pl.cdiv(B, TB),)  # uneven tail handled by Pallas masked boundary block

    return pl.pallas_call(
        _mlp_kernel,
        out_shape=jax.ShapeDtypeStruct((B, C), jnp.float32),
        grid=grid,
        in_specs=[
            pl.BlockSpec((TB, D),  lambda i: (i, 0)),   # x: streamed per batch tile, f32, unpadded
            pl.BlockSpec((D, H1),  lambda i: (0, 0)),   # weights/biases: resident (constant index)
            pl.BlockSpec((1, H1),  lambda i: (0, 0)),
            pl.BlockSpec((H1, H2), lambda i: (0, 0)),
            pl.BlockSpec((1, H2),  lambda i: (0, 0)),
            pl.BlockSpec((H2, C),  lambda i: (0, 0)),
            pl.BlockSpec((1, C),   lambda i: (0, 0)),
        ],
        out_specs=pl.BlockSpec((TB, C), lambda i: (i, 0)),
        compiler_params=pltpu.CompilerParams(
            dimension_semantics=("parallel",),   # megacore sharding on v7x; no-op on v5e/v6e
        ),
    )(x, w1, b1, w2, b2, w3, b3)


def init_params(key, input_dims, n_classes):
    """Deterministic init matching nn.Linear shapes (weights stored as [in, out])."""
    ks = jax.random.split(key, 6)

    def linear(kw, kb, fan_in, fan_out):
        bound = 1.0 / jnp.sqrt(fan_in)
        w = jax.random.uniform(kw, (fan_in, fan_out), jnp.float32, -bound, bound)
        b = jax.random.uniform(kb, (1, fan_out), jnp.float32, -bound, bound)
        return w, b

    w1, b1 = linear(ks[0], ks[1], input_dims, 128)
    w2, b2 = linear(ks[2], ks[3], 128, 256)
    w3, b3 = linear(ks[4], ks[5], 256, n_classes)
    return {"w1": w1, "b1": b1, "w2": w2, "b2": b2, "w3": w3, "b3": b3}


def _reference_forward(x, p):
    h1 = jax.nn.sigmoid(x @ p["w1"] + p["b1"])
    h2 = jax.nn.sigmoid(h1 @ p["w2"] + p["b2"])
    return h2 @ p["w3"] + p["b3"]


if __name__ == "__main__":
    key = jax.random.PRNGKey(0)
    k_x, k_p = jax.random.split(key)

    batch = 8
    input_dims = 32     # LinearClassifier(input_dims=(32,))
    n_classes = 10

    x = jax.random.normal(k_x, (batch, input_dims), dtype=jnp.float32)
    params = init_params(k_p, input_dims, n_classes)
    prepped = prepare_params(params)            # one-time weight prep, outside the call path

    fwd = jax.jit(linear_classifier_forward)
    out = jax.block_until_ready(fwd(x, prepped))

    ref = _reference_forward(x, params)
    assert out.shape == (batch, n_classes)
    # bf16 matmul operands (f32 accumulate) -> loosened tolerance vs the f32 reference.
    assert jnp.allclose(out, ref, atol=3e-2, rtol=3e-2), float(jnp.max(jnp.abs(out - ref)))

    print("KERNEL_OK")
</pallas_src>

<mosaic_0001>
module attributes {stable_mosaic.version = 11 : i64} {
  func.func @_mlp_kernel(%arg0: i32, %arg1: memref<8x32xf32, #tpu.memory_space<vmem>>, %arg2: memref<32x128xbf16, #tpu.memory_space<vmem>>, %arg3: memref<1x128xf32, #tpu.memory_space<vmem>>, %arg4: memref<128x256xbf16, #tpu.memory_space<vmem>>, %arg5: memref<1x256xf32, #tpu.memory_space<vmem>>, %arg6: memref<256x10xbf16, #tpu.memory_space<vmem>>, %arg7: memref<1x10xf32, #tpu.memory_space<vmem>>, %arg8: memref<8x10xf32, #tpu.memory_space<vmem>>) attributes {dimension_semantics = [#tpu.dimension_semantics<parallel>], iteration_bounds = array<i64: 1>, scalar_prefetch = 0 : i64, scratch_operands = 0 : i64, tpu.core_type = #tpu.core_type<tc>, window_params = [{transform_indices = @transform_0, window_bounds = array<i64: 8, 32>}, {pipeline_mode = #tpu.pipeline_mode<synchronous>, transform_indices = @transform_1, window_bounds = array<i64: 32, 128>}, {pipeline_mode = #tpu.pipeline_mode<synchronous>, transform_indices = @transform_2, window_bounds = array<i64: 1, 128>}, {pipeline_mode = #tpu.pipeline_mode<synchronous>, transform_indices = @transform_3, window_bounds = array<i64: 128, 256>}, {pipeline_mode = #tpu.pipeline_mode<synchronous>, transform_indices = @transform_4, window_bounds = array<i64: 1, 256>}, {pipeline_mode = #tpu.pipeline_mode<synchronous>, transform_indices = @transform_5, window_bounds = array<i64: 256, 10>}, {pipeline_mode = #tpu.pipeline_mode<synchronous>, transform_indices = @transform_6, window_bounds = array<i64: 1, 10>}, {transform_indices = @transform_7, window_bounds = array<i64: 8, 10>}]} {
    %c0 = arith.constant 0 : index
    %c0_0 = arith.constant 0 : index
    %0 = vector.load %arg1[%c0, %c0_0] : memref<8x32xf32, #tpu.memory_space<vmem>>, vector<8x32xf32>
    %1 = arith.truncf %0 : vector<8x32xf32> to vector<8x32xbf16>
    %c0_1 = arith.constant 0 : index
    %c0_2 = arith.constant 0 : index
    %2 = vector.load %arg2[%c0_1, %c0_2] : memref<32x128xbf16, #tpu.memory_space<vmem>>, vector<32x128xbf16>
    %cst = arith.constant dense<0.000000e+00> : vector<8x128xf32>
    %3 = tpu.matmul %1, %2, %cst {dimension_numbers = #tpu.dot_dimension_numbers<[1], [0], [0], [1], [0, 0, 1, 1], [], []>} : vector<8x32xbf16>, vector<32x128xbf16>, vector<8x128xf32> -> vector<8x128xf32>
    %c0_3 = arith.constant 0 : index
    %c0_4 = arith.constant 0 : index
    %4 = vector.load %arg3[%c0_3, %c0_4] : memref<1x128xf32, #tpu.memory_space<vmem>>, vector<1x128xf32>
    %5 = vector.broadcast %4 : vector<1x128xf32> to vector<8x128xf32>
    %6 = arith.addf %3, %5 : vector<8x128xf32>
    %cst_5 = arith.constant 5.000000e-01 : f32
    %7 = vector.broadcast %cst_5 : f32 to vector<8x128xf32>
    %8 = arith.mulf %7, %6 : vector<8x128xf32>
    %9 = math.tanh %8 : vector<8x128xf32>
    %cst_6 = arith.constant 1.000000e+00 : f32
    %10 = vector.broadcast %cst_6 : f32 to vector<8x128xf32>
    %11 = arith.addf %9, %10 : vector<8x128xf32>
    %cst_7 = arith.constant 5.000000e-01 : f32
    %12 = vector.broadcast %cst_7 : f32 to vector<8x128xf32>
    %13 = arith.mulf %12, %11 : vector<8x128xf32>
    %14 = arith.truncf %13 : vector<8x128xf32> to vector<8x128xbf16>
    %c0_8 = arith.constant 0 : index
    %c0_9 = arith.constant 0 : index
    %15 = vector.load %arg4[%c0_8, %c0_9] : memref<128x256xbf16, #tpu.memory_space<vmem>>, vector<128x256xbf16>
    %cst_10 = arith.constant dense<0.000000e+00> : vector<8x256xf32>
    %16 = tpu.matmul %14, %15, %cst_10 {dimension_numbers = #tpu.dot_dimension_numbers<[1], [0], [0], [1], [0, 0, 1, 1], [], []>} : vector<8x128xbf16>, vector<128x256xbf16>, vector<8x256xf32> -> vector<8x256xf32>
    %c0_11 = arith.constant 0 : index
    %c0_12 = arith.constant 0 : index
    %17 = vector.load %arg5[%c0_11, %c0_12] : memref<1x256xf32, #tpu.memory_space<vmem>>, vector<1x256xf32>
    %18 = vector.broadcast %17 : vector<1x256xf32> to vector<8x256xf32>
    %19 = arith.addf %16, %18 : vector<8x256xf32>
    %cst_13 = arith.constant 5.000000e-01 : f32
    %20 = vector.broadcast %cst_13 : f32 to vector<8x256xf32>
    %21 = arith.mulf %20, %19 : vector<8x256xf32>
    %22 = math.tanh %21 : vector<8x256xf32>
    %cst_14 = arith.constant 1.000000e+00 : f32
    %23 = vector.broadcast %cst_14 : f32 to vector<8x256xf32>
    %24 = arith.addf %22, %23 : vector<8x256xf32>
    %cst_15 = arith.constant 5.000000e-01 : f32
    %25 = vector.broadcast %cst_15 : f32 to vector<8x256xf32>
    %26 = arith.mulf %25, %24 : vector<8x256xf32>
    %27 = arith.truncf %26 : vector<8x256xf32> to vector<8x256xbf16>
    %c0_16 = arith.constant 0 : index
    %c0_17 = arith.constant 0 : index
    %28 = vector.load %arg6[%c0_16, %c0_17] : memref<256x10xbf16, #tpu.memory_space<vmem>>, vector<256x10xbf16>
    %cst_18 = arith.constant dense<0.000000e+00> : vector<8x10xf32>
    %29 = tpu.matmul %27, %28, %cst_18 {dimension_numbers = #tpu.dot_dimension_numbers<[1], [0], [0], [1], [0, 0, 1, 1], [], []>} : vector<8x256xbf16>, vector<256x10xbf16>, vector<8x10xf32> -> vector<8x10xf32>
    %c0_19 = arith.constant 0 : index
    %c0_20 = arith.constant 0 : index
    %30 = vector.load %arg7[%c0_19, %c0_20] : memref<1x10xf32, #tpu.memory_space<vmem>>, vector<1x10xf32>
    %31 = vector.broadcast %30 : vector<1x10xf32> to vector<8x10xf32>
    %32 = arith.addf %29, %31 : vector<8x10xf32>
    %c0_21 = arith.constant 0 : index
    %c0_22 = arith.constant 0 : index
    %33 = vector.load %arg8[%c0_21, %c0_22] : memref<8x10xf32, #tpu.memory_space<vmem>>, vector<8x10xf32>
    tpu.vector_store %arg8[%c0_21, %c0_22], %32 {strides = array<i32>} : memref<8x10xf32, #tpu.memory_space<vmem>>, vector<8x10xf32>,
    return
  }
  func.func @transform_0(%arg0: i32) -> (i32, i32) {
    %c0_i32 = arith.constant 0 : i32
    %c0_i32_0 = arith.constant 0 : i32
    return %arg0, %c0_i32 : i32, i32
  }
  func.func @transform_1(%arg0: i32) -> (i32, i32) {
    %c0_i32 = arith.constant 0 : i32
    %c0_i32_0 = arith.constant 0 : i32
    %c0_i32_1 = arith.constant 0 : i32
    return %c0_i32, %c0_i32_0 : i32, i32
  }
  func.func @transform_2(%arg0: i32) -> (i32, i32) {
    %c0_i32 = arith.constant 0 : i32
    %c0_i32_0 = arith.constant 0 : i32
    %c0_i32_1 = arith.constant 0 : i32
    return %c0_i32, %c0_i32_0 : i32, i32
  }
  func.func @transform_3(%arg0: i32) -> (i32, i32) {
    %c0_i32 = arith.constant 0 : i32
    %c0_i32_0 = arith.constant 0 : i32
    %c0_i32_1 = arith.constant 0 : i32
    return %c0_i32, %c0_i32_0 : i32, i32
  }
  func.func @transform_4(%arg0: i32) -> (i32, i32) {
    %c0_i32 = arith.constant 0 : i32
    %c0_i32_0 = arith.constant 0 : i32
    %c0_i32_1 = arith.constant 0 : i32
    return %c0_i32, %c0_i32_0 : i32, i32
  }
  func.func @transform_5(%arg0: i32) -> (i32, i32) {
    %c0_i32 = arith.constant 0 : i32
    %c0_i32_0 = arith.constant 0 : i32
    %c0_i32_1 = arith.constant 0 : i32
    return %c0_i32, %c0_i32_0 : i32, i32
  }
  func.func @transform_6(%arg0: i32) -> (i32, i32) {
    %c0_i32 = arith.constant 0 : i32
    %c0_i32_0 = arith.constant 0 : i32
    %c0_i32_1 = arith.constant 0 : i32
    return %c0_i32, %c0_i32_0 : i32, i32
  }
  func.func @transform_7(%arg0: i32) -> (i32, i32) {
    %c0_i32 = arith.constant 0 : i32
    %c0_i32_0 = arith.constant 0 : i32
    return %arg0, %c0_i32 : i32, i32
  }
}

</mosaic_0001>

<bundles_post_ra>
// kernel: linear_classifier_forward.1
= control target key start
LH: loop header
LB: loop body
LE: loop exit
PB: predicated region body
PF: predicated region fallthrough
CT: control target
= control target key end

     0   :  { %12 = vsyncpa [#allocation3], 0  ;;  %s841_s0 = inlined_call_operand.hbm [shape: f32[8,32], index: 0, kind: input, shape index: {}]   ;;  %s842_s1 = inlined_call_operand.vmem [shape: bf16[32,128], index: 1, kind: input, shape index: {}]   ;;  %s843_s2 = inlined_call_operand.vmem [shape: f32[1,128], index: 2, kind: input, shape index: {}]   ;;  %s844_s3 = inlined_call_operand.vmem [shape: bf16[128,256], index: 3, kind: input, shape index: {}]   ;;  %s845_s4 = inlined_call_operand.vmem [shape: f32[1,256], index: 4, kind: input, shape index: {}]   ;;  %s846_s5 = inlined_call_operand.vmem [shape: bf16[256,10], index: 5, kind: input, shape index: {}]   ;;  %s847_s6 = inlined_call_operand.vmem [shape: f32[1,10], index: 6, kind: input, shape index: {}]   ;;  %s848_s7 = inlined_call_operand.hbm [shape: f32[8,10], index: 7, kind: output, shape index: {}]  }
   0x1   :  { %13 = vsyncpa [#allocation4], 0  ;;  %s19_s26 = sshll.u32 %s841_s0, 4  ;;  %s634_s27 = smov [#allocation2]   ;;  %s20_s26 = int_to_ptr.hbm [resolvable:$true] %s19_s26 }
   0x2   :  { %s21_s28 = sshll.u32 %s634_s27, 4  ;;  %s22_s28 = int_to_ptr.vmem [resolvable:$true] %s21_s28 }
   0x3   :  { %24 = dma.hbm_to_vmem [thread:$0]  %s20_s26, 128, %s22_s28, [#allocation3]  }
   0x4   :  { %630 = dma.done.wait [#allocation3], 128  }
   0x5   :  { %631 = vsyncadd [#allocation3], 4294967168  ;;  %v539_v0 = vld [vmem:[%s842_s1 + $0x8] sm:$0xff]  ;;  %v538_v1 = vld [vmem:[%s842_s1] sm:$0xff]  ;;  %vm64_vm0 = vcmask 261120   ;;  %s635_s30 = smov [#allocation5]  }
   0x6   :  { %v42_v2 = vld [vmem:[#allocation2] sm:$0xff]  ;;  %v468_v3 = vld [vmem:[%s844_s3 + $0x70] sm:$0xf]  ;;  %v555_v4 = vld [vmem:[%s844_s3 + $0x74] sm:$0xf0]  ;;  %74 = vmatpush.bf16.msra.mxu0 %v539_v0  ;;  %s389_s8 = sshll.u32 %s635_s30, 4  ;;  %s390_s8 = int_to_ptr.vmem [resolvable:$true] %s389_s8 }
   0x7   :  { %v554_v5 = vld [vmem:[%s844_s3 + $0x74] sm:$0xf]  ;;  %v469_v6 = vor.u32 %v555_v4, %v468_v3  ;;  %v470_v7 = vld [vmem:[%s844_s3 + $0x78] sm:$0xf0]  ;;  %v460_v8 = vld [vmem:[%s844_s3 + $0x60] sm:$0xf]  ;;  %v43_v14 = vpack.c.bf16 %v42_v2, %v42_v2 }
   0x8   :  { %v553_v9 = vld [vmem:[%s844_s3 + $0x64] sm:$0xf0]  ;;  %v473_v10 = vor.u32 %v554_v5, %v470_v7  ;;  %v552_v11 = vld [vmem:[%s844_s3 + $0x64] sm:$0xf]  ;;  %v462_v12 = vld [vmem:[%s844_s3 + $0x68] sm:$0xf0] }
   0x9   :  { %188 = vmatpush.bf16.msra.mxu1 %v469_v6  ;;  %v461_v13 = vor.u32 %v553_v9, %v460_v8  ;;  %v465_v15 = vor.u32 %v552_v11, %v462_v12  ;;  %v452_v16 = vld [vmem:[%s844_s3 + $0x50] sm:$0xf]  ;;  %v551_v17 = vld [vmem:[%s844_s3 + $0x54] sm:$0xf0]  ;;  %v550_v18 = vld [vmem:[%s844_s3 + $0x54] sm:$0xf] }
   0xa   :  { %201 = vmatpush.bf16.msra.mxu2 %v473_v10  ;;  %75 = vmatpush.bf16.msra.mxu0 %v538_v1  ;;  %v454_v19 = vld [vmem:[%s844_s3 + $0x58] sm:$0xf0]  ;;  %v453_v20 = vor.u32 %v551_v17, %v452_v16  ;;  %v444_v22 = vld [vmem:[%s844_s3 + $0x40] sm:$0xf]  ;;  %v549_v23 = vld [vmem:[%s844_s3 + $0x44] sm:$0xf0] }
   0xb   :  { %v457_v21 = vor.u32 %v550_v18, %v454_v19  ;;  %v548_v24 = vld [vmem:[%s844_s3 + $0x44] sm:$0xf]  ;;  %v446_v25 = vld [vmem:[%s844_s3 + $0x48] sm:$0xf0]  ;;  %v445_v26 = vor.u32 %v549_v23, %v444_v22  ;;  %v436_v28 = vld [vmem:[%s844_s3 + $0x30] sm:$0xf] }
   0xc   :  { %v449_v27 = vor.u32 %v548_v24, %v446_v25  ;;  %v547_v29 = vld [vmem:[%s844_s3 + $0x34] sm:$0xf0]  ;;  %v546_v30 = vld [vmem:[%s844_s3 + $0x34] sm:$0xf]  ;;  %v438_v32 = vld [vmem:[%s844_s3 + $0x38] sm:$0xf0] }
   0xd   :  { %189 = vmatpush.bf16.msra.mxu1 %v461_v13  ;;  %409 = vmatmul.msk.bf16.vlgmr.msra.gmra.mxu0 %vm64_vm0, %v43_v14  ;;  %v437_v31 = vor.u32 %v547_v29, %v436_v28  ;;  %v441_v33 = vor.u32 %v546_v30, %v438_v32  ;;  %v428_v34 = vld [vmem:[%s844_s3 + $0x20] sm:$0xf]  ;;  %v545_v35 = vld [vmem:[%s844_s3 + $0x24] sm:$0xf0]  ;;  %v544_v36 = vld [vmem:[%s844_s3 + $0x24] sm:$0xf] }
   0xe   :  { %202 = vmatpush.bf16.msra.mxu2 %v465_v15  ;;  %v429_v37 = vor.u32 %v545_v35, %v428_v34  ;;  %v430_v38 = vld [vmem:[%s844_s3 + $0x28] sm:$0xf0]  ;;  %v420_v40 = vld [vmem:[%s844_s3 + $0x10] sm:$0xf]  ;;  %v543_v41 = vld [vmem:[%s844_s3 + $0x14] sm:$0xf0] }
   0xf   :  { %v433_v39 = vor.u32 %v544_v36, %v430_v38  ;;  %v542_v42 = vld [vmem:[%s844_s3 + $0x14] sm:$0xf]  ;;  %v421_v43 = vor.u32 %v543_v41, %v420_v40  ;;  %v422_v44 = vld [vmem:[%s844_s3 + $0x18] sm:$0xf0]  ;;  %v412_v45 = vld [vmem:[%s844_s3] sm:$0xf] }
  0x10   :  { %v541_v46 = vld [vmem:[%s844_s3 + $0x4] sm:$0xf0]  ;;  %v425_v47 = vor.u32 %v542_v42, %v422_v44  ;;  %v540_v48 = vld [vmem:[%s844_s3 + $0x4] sm:$0xf]  ;;  %v414_v49 = vld [vmem:[%s844_s3 + $0x8] sm:$0xf0] }
  0x11   :  { %190 = vmatpush.bf16.msra.mxu1 %v453_v20  ;;  %v413_v50 = vor.u32 %v541_v46, %v412_v45  ;;  %v417_v51 = vor.u32 %v540_v48, %v414_v49  ;;  %v563_v52 = vld [vmem:[%s846_s5 + $0x38] sm:$0xff]  ;;  %v562_v54 = vld [vmem:[%s846_s5 + $0x30] sm:$0xff]  ;;  %v561_v56 = vld [vmem:[%s846_s5 + $0x28] sm:$0xff]  ;;  %s391_s11 = sshll.u32 %s848_s7, 4  ;;  %vm382_vm1 = vcmask 80896   ;;  %s392_s11 = int_to_ptr.hbm [resolvable:$true] %s391_s11 }
  0x12   :  { %203 = vmatpush.bf16.msra.mxu2 %v457_v21  ;;  %v571_v53 = vld [vmem:[%s846_s5 + $0x78] sm:$0xff]  ;;  %356 = vmatpush.bf16.msra.mxu3 %v563_v52  ;;  %v570_v55 = vld [vmem:[%s846_s5 + $0x70] sm:$0xff]  ;;  %v560_v57 = vld [vmem:[%s846_s5 + $0x20] sm:$0xff] }
  0x13   :  { %369 = vmatpush.bf16.msrb.mxu0 %v571_v53  ;;  %v574_v58 = vld [vmem:[%s843_s2] ss:$0 sm:$0xff]  ;;  %v569_v3 = vld [vmem:[%s846_s5 + $0x68] sm:$0xff]  ;;  %v559_v4 = vld [vmem:[%s846_s5 + $0x18] sm:$0xff] }
  0x14   :  { %v568_v5 = vld [vmem:[%s846_s5 + $0x60] sm:$0xff]  ;;  %v558_v6 = vld [vmem:[%s846_s5 + $0x10] sm:$0xff]  ;;  %v567_v7 = vld [vmem:[%s846_s5 + $0x58] sm:$0xff] }
  0x15   :  { %191 = vmatpush.bf16.msra.mxu1 %v445_v26  ;;  %v557_v8 = vld [vmem:[%s846_s5 + $0x8] sm:$0xff]  ;;  %v566_v9 = vld [vmem:[%s846_s5 + $0x50] sm:$0xff]  ;;  %v556_v10 = vld [vmem:[%s846_s5] sm:$0xff] }
  0x16   :  { %204 = vmatpush.bf16.msra.mxu2 %v449_v27  ;;  %357 = vmatpush.bf16.msra.mxu3 %v562_v54  ;;  %v565_v11 = vld [vmem:[%s846_s5 + $0x48] sm:$0xff]  ;;  %v564_v12 = vld [vmem:[%s846_s5 + $0x40] sm:$0xff] }
  0x17   :  { %370 = vmatpush.bf16.msrb.mxu0 %v570_v55  ;;  %v102_v13 = vld [vmem:[%s845_s4] sm:$0x3] }
  0x18   :  { %v104_v14 = vperm.slane %v102_v13, 0  ;;  %v105_v18 = vperm.slane %v102_v13, 1  ;;  %v575_v32 = vld [vmem:[%s847_s6] ss:$0 sm:$0xff] }
  0x19   :  { %192 = vmatpush.bf16.msra.mxu1 %v437_v31 }
  0x1a   :  { %205 = vmatpush.bf16.msra.mxu2 %v441_v33  ;;  %358 = vmatpush.bf16.msra.mxu3 %v561_v56 }
  0x1b   :  { %371 = vmatpush.bf16.msrb.mxu0 %v569_v3 }
  0x1d   :  { %193 = vmatpush.bf16.msra.mxu1 %v429_v37 }
  0x1e   :  { %206 = vmatpush.bf16.msra.mxu2 %v433_v39  ;;  %359 = vmatpush.bf16.msra.mxu3 %v560_v57 }
  0x1f   :  { %372 = vmatpush.bf16.msrb.mxu0 %v568_v5 }
  0x21   :  { %194 = vmatpush.bf16.msra.mxu1 %v421_v43 }
  0x22   :  { %207 = vmatpush.bf16.msra.mxu2 %v425_v47  ;;  %360 = vmatpush.bf16.msra.mxu3 %v559_v4 }
  0x23   :  { %373 = vmatpush.bf16.msrb.mxu0 %v567_v7 }
  0x25   :  { %195 = vmatpush.bf16.msra.mxu1 %v413_v50 }
  0x26   :  { %208 = vmatpush.bf16.msra.mxu2 %v417_v51  ;;  %361 = vmatpush.bf16.msra.mxu3 %v558_v6 }
  0x27   :  { %374 = vmatpush.bf16.msrb.mxu0 %v566_v9 }
  0x2a   :  { %362 = vmatpush.bf16.msra.mxu3 %v557_v8 }
  0x2b   :  { %375 = vmatpush.bf16.msrb.mxu0 %v565_v11 }
  0x2e   :  { %363 = vmatpush.bf16.msra.mxu3 %v556_v10 }
  0x2f   :  { %376 = vmatpush.bf16.msrb.mxu0 %v564_v12 }
  0x8a   :  { %v77_v59 = vpop.f32.mrf.mxu0 }
  0x8b   :  { %v78_v60 = vadd.f32 %v574_v58, %v77_v59 }
  0x8d   :  { %v81_v61 = vmul.f32 0.5, %v78_v60 }
  0x8f   :  { %576 = vtanh.f32 %v81_v61 }
  0x92   :  { %v79_v62 = vpop.f32.mrf.mxu0 }
  0x95   :  { %v577_v63 = vpop.eup %576 }
  0x96   :  { %v83_v0 = vadd.f32 1.0, %v577_v63 }
  0x98   :  { %v84_v1 = vmul.f32 0.5, %v83_v0 }
  0x9a   :  { %v85_v2 = vpack.c.bf16 %v84_v1, %v84_v1 }
  0x9c   :  { %196 = vmatmul.bf16.vlgmr.msra.gmra.mxu1 %v85_v2  ;;  %209 = vmatmul.bf16.vlgmr.msra.gmra.mxu2 %v85_v2 }
 0x119   :  { %v197_v15 = vpop.f32.mrf.mxu1 }
 0x11a   :  { %v198_v16 = vadd.f32 %v197_v15, %v104_v14 }
 0x11c   :  { %v214_v17 = vmul.f32 0.5, %v198_v16 }
 0x11e   :  { %578 = vtanh.f32 %v214_v17 }
 0x11f   :  { %v210_v19 = vpop.f32.mrf.mxu2 }
 0x120   :  { %v211_v20 = vadd.f32 %v210_v19, %v105_v18 }
 0x121   :  { %v199_v21 = vpop.f32.mrf.mxu1 }
 0x122   :  { %v215_v22 = vmul.f32 0.5, %v211_v20 }
 0x124   :  { %v579_v23 = vpop.eup %578  ;;  %580 = vtanh.f32 %v215_v22 }
 0x125   :  { %v218_v24 = vadd.f32 1.0, %v579_v23 }
 0x127   :  { %v212_v25 = vpop.f32.mrf.mxu2  ;;  %v220_v26 = vmul.f32 0.5, %v218_v24 }
 0x129   :  { %v222_v27 = vpack.c.bf16 %v220_v26, %v220_v26 }
 0x12a   :  { %v581_v28 = vpop.eup %580 }
 0x12b   :  { %v219_v29 = vadd.f32 1.0, %v581_v28  ;;  %364 = vmatmul.bf16.vlgmr.msra.gmra.mxu3 %v222_v27 }
 0x12d   :  { %v221_v30 = vmul.f32 0.5, %v219_v29 }
 0x12f   :  { %v223_v31 = vpack.c.bf16 %v221_v30, %v221_v30 }
 0x131   :  { %377 = vmatmul.bf16.vlgmr.msrb.gmra.mxu0 %v223_v31 }
 0x1ae   :  { %v365_v33 = vpop.f32.mrf.mxu3  ;;  %v378_v34 = vpop.f32.mrf.mxu0 }
 0x1af   :  { %v366_v35 = vadd.f32 %v575_v32, %v365_v33 }
 0x1b1   :  { %v379_v36 = vadd.f32 %v378_v34, %v366_v35 }
 0x1b3   :  { %383 = vst.msk [vmem:[#allocation5] sm:$0xff] %vm382_vm1, %v379_v36 }
 0x1b4   :  { %394 = dma.vmem_to_hbm [thread:$0]  %s390_s8, 128, %s392_s11, [#allocation4]  }
 0x1b6   :  { %v367_v37 = vpop.f32.mrf.mxu3  ;;  %v380_v38 = vpop.f32.mrf.mxu0 }
 0x1b7   :  { %632 = dma.done.wait [#allocation4], 128  }
 0x1b8   :  { %633 = vsyncadd [#allocation4], 4294967168 }
 0x1b9   :  { %399 = vsyncpa [#allocation3], 1 }
 0x1ba   :  { %400 = vsyncpa [#allocation4], 1 }

</bundles_post_ra>
